<compile_context>
chip_gen: v7x
topology: tpu7x:2x2x1
jax: 0.10.0
libtpu: 0.0.40
codegen_flags: <defaults>
</compile_context>

<pallas_src>
import functools

import jax
import jax.numpy as jnp
from jax.experimental import pallas as pl
from jax.experimental.pallas import tpu as pltpu


def _round_up(x: int, m: int) -> int:
    return ((x + m - 1) // m) * m


def _roberta_output_kernel(x_ref, w_ref, vec_ref, res_ref, o_ref, *, eps: float):
    # Dense: x @ W^T on the MXU, native operand dtype, f32 accumulation.
    y = jnp.dot(x_ref[...], w_ref[...], preferred_element_type=jnp.float32)

    # Dropout: identity in eval mode.
    # TODO(synk): training-mode dropout (pltpu.prng_random_bits mask) not emitted.

    v = vec_ref[...]                       # (3, D_out) f32: [bias; gamma; beta]
    bias, gamma, beta = v[0:1, :], v[1:2, :], v[2:3, :]

    # Residual add with the Linear bias folded in (single f32 cast at add site).
    z = y + (res_ref[...].astype(jnp.float32) + bias)

    # LayerNorm over the hidden (last / lane) axis, two-pass, in f32.
    mean = jnp.mean(z, axis=-1, keepdims=True)
    cent = z - mean
    var = jnp.mean(cent * cent, axis=-1, keepdims=True)
    zn = cent * jax.lax.rsqrt(var + eps)
    o_ref[...] = (zn * gamma + beta).astype(o_ref.dtype)


def _vmem_ceiling_bytes() -> int:
    """Generation-aware VMEM cap: physical capacity minus compiler headroom."""
    try:
        cap = int(pltpu.get_tpu_info().vmem_capacity_bytes)
    except Exception:
        cap = 64 << 20                     # conservative: v7x per-TensorCore VMEM
    return max(16 << 20, cap - (12 << 20))


def _vmem_budget_bytes(tm, d_in, d_out, x_dt, w_dt, res_dt, out_dt):
    isz = lambda dt: jnp.dtype(dt).itemsize
    d_out_pad = _round_up(d_out, 128)
    est = 0
    est += 2 * tm * d_in * isz(x_dt)          # x row-tile (double buffered)
    est += 1 * d_in * d_out_pad * isz(w_dt)   # resident weight (single buffered)
    est += 2 * tm * d_out_pad * isz(res_dt)   # residual tile (double buffered)
    est += 2 * tm * d_out_pad * isz(out_dt)   # output tile (double buffered)
    est += 8 * d_out_pad * 4                  # packed bias/gamma/beta ((8,128) padded)
    est += 4 * tm * d_out_pad * 4             # f32 LN intermediates (y/z/cent/zn)
    est = int(est * 1.2) + (2 << 20)          # compiler scratch headroom
    return int(min(max(est, 16 << 20), _vmem_ceiling_bytes()))


def roberta_output(hidden_states, input_tensor, w_t, bias, gamma, beta,
                   *, eps=1e-12, tm=512):
    """RobertaOutput forward (eval mode).

    hidden_states: [B, S, D_in]   intermediate activations (keep bf16 in prod;
                                  operands are fed to the MXU in native dtype)
    input_tensor:  [B, S, D_out]  residual stream
    w_t:           [D_in, D_out]  nn.Linear weight, pre-transposed (W.T)
    bias, gamma, beta: [D_out]    Linear bias / LayerNorm affine params
    """
    B, S, D_in = hidden_states.shape
    D_out = input_tensor.shape[-1]
    assert w_t.shape == (D_in, D_out)

    T = B * S
    x2 = hidden_states.reshape(T, D_in)
    r2 = input_tensor.reshape(T, D_out)
    # Pack the three per-feature vectors into one small resident f32 tile.
    vec = jnp.stack([bias, gamma, beta], axis=0).astype(jnp.float32)  # (3, D_out)

    # Row tile: multiple of the dtype's packed sublane count (16 bf16 / 8 f32 /
    # 32 int8/fp8).  For small T split into >=2 grid steps so both v7x
    # TensorCores get work.  No host-side padding: the ragged last block is
    # handled by Pallas (OOB reads are garbage-but-unused, OOB writes dropped).
    row_mult = {2: 16, 1: 32}.get(jnp.dtype(x2.dtype).itemsize, 8)
    tm = _round_up(max(row_mult, min(tm, 1024)), row_mult)
    if T <= tm:
        tm = max(row_mult, _round_up(pl.cdiv(T, 2), row_mult))
    grid = (pl.cdiv(T, tm),)

    out_dtype = hidden_states.dtype
    vmem_bytes = _vmem_budget_bytes(tm, D_in, D_out, x2.dtype, w_t.dtype,
                                    r2.dtype, out_dtype)

    isz = lambda dt: jnp.dtype(dt).itemsize
    cost = pl.CostEstimate(
        flops=2 * T * D_in * D_out,
        transcendentals=T,                 # one rsqrt per row
        bytes_accessed=(T * D_in * isz(x2.dtype)
                        + D_in * D_out * isz(w_t.dtype)
                        + T * D_out * (isz(r2.dtype) + isz(out_dtype))
                        + 3 * D_out * 4),
    )

    # Constant-index operands: single-buffered (double-buffering buys nothing).
    resident = dict(pipeline_mode=pl.Buffered(buffer_count=1))

    out = pl.pallas_call(
        functools.partial(_roberta_output_kernel, eps=eps),
        out_shape=jax.ShapeDtypeStruct((T, D_out), out_dtype),
        grid_spec=pltpu.PrefetchScalarGridSpec(
            num_scalar_prefetch=0,
            grid=grid,
            in_specs=[
                pl.BlockSpec((tm, D_in), lambda i: (i, 0)),                  # x tile
                pl.BlockSpec((D_in, D_out), lambda i: (0, 0), **resident),   # W^T
                pl.BlockSpec((3, D_out), lambda i: (0, 0), **resident),      # b/g/beta
                pl.BlockSpec((tm, D_out), lambda i: (i, 0)),                 # residual
            ],
            out_specs=pl.BlockSpec((tm, D_out), lambda i: (i, 0)),
        ),
        compiler_params=pltpu.CompilerParams(
            dimension_semantics=("parallel",),
            vmem_limit_bytes=vmem_bytes),
        cost_estimate=cost,
    )(x2, w_t, vec, r2)

    return out.reshape(B, S, D_out)


def reference(hidden_states, input_tensor, w_t, bias, gamma, beta, eps=1e-12):
    y = jnp.einsum("bsi,io->bso", hidden_states.astype(jnp.float32),
                   w_t.astype(jnp.float32)) + bias.astype(jnp.float32)
    z = y + input_tensor.astype(jnp.float32)
    mean = jnp.mean(z, axis=-1, keepdims=True)
    var = jnp.mean((z - mean) ** 2, axis=-1, keepdims=True)
    return ((z - mean) * jax.lax.rsqrt(var + eps)) * gamma + beta


if __name__ == "__main__":
    # Small shapes consistent with the module: intermediate_size != hidden_size.
    B, S, D_IN, D_OUT = 2, 8, 64, 32
    EPS = 1e-12  # config.layer_norm_eps (RoBERTa default)

    key = jax.random.PRNGKey(0)
    k1, k2, k3, k4, k5 = jax.random.split(key, 5)

    hidden_states = jax.random.normal(k1, (B, S, D_IN), dtype=jnp.float32)
    input_tensor = jax.random.normal(k2, (B, S, D_OUT), dtype=jnp.float32)

    # nn.Linear(D_IN, D_OUT): weight [D_OUT, D_IN], bias [D_OUT]; we pass W.T.
    w = jax.random.normal(k3, (D_OUT, D_IN), dtype=jnp.float32) / jnp.sqrt(D_IN)
    w_t = w.T
    bias = 0.02 * jax.random.normal(k4, (D_OUT,), dtype=jnp.float32)
    gamma = jnp.ones((D_OUT,), jnp.float32) + 0.01 * jax.random.normal(
        k5, (D_OUT,), dtype=jnp.float32)
    beta = jnp.zeros((D_OUT,), jnp.float32)

    # f32 correctness check.
    out = roberta_output(hidden_states, input_tensor, w_t, bias, gamma, beta,
                         eps=EPS)
    out = jax.block_until_ready(out)
    ref = reference(hidden_states, input_tensor, w_t, bias, gamma, beta, EPS)
    assert out.shape == (B, S, D_OUT)
    assert jnp.allclose(out, ref, atol=1e-4, rtol=1e-4), "f32 mismatch vs ref"

    # Ragged-tail path: T not a multiple of the row tile, no host-side padding.
    hs_r = jax.random.normal(k1, (3, 5, D_IN), dtype=jnp.float32)
    it_r = jax.random.normal(k2, (3, 5, D_OUT), dtype=jnp.float32)
    out_r = jax.block_until_ready(
        roberta_output(hs_r, it_r, w_t, bias, gamma, beta, eps=EPS))
    ref_r = reference(hs_r, it_r, w_t, bias, gamma, beta, EPS)
    assert jnp.allclose(out_r, ref_r, atol=1e-4, rtol=1e-4), "ragged mismatch"

    # bf16 production path: native bf16 operands straight into the MXU.
    out_bf16 = roberta_output(hidden_states.astype(jnp.bfloat16),
                              input_tensor.astype(jnp.bfloat16),
                              w_t.astype(jnp.bfloat16),
                              bias, gamma, beta, eps=EPS)
    out_bf16 = jax.block_until_ready(out_bf16)
    assert jnp.allclose(out_bf16.astype(jnp.float32), ref,
                        atol=1e-1, rtol=1e-1), "bf16 mismatch vs ref"

    print("KERNEL_OK")
</pallas_src>

<mosaic_0001>
module attributes {stable_mosaic.version = 11 : i64} {
  func.func @_roberta_output_kernel(%arg0: i32, %arg1: memref<8x64xf32, #tpu.memory_space<vmem>>, %arg2: memref<64x32xf32, #tpu.memory_space<vmem>>, %arg3: memref<3x32xf32, #tpu.memory_space<vmem>>, %arg4: memref<8x32xf32, #tpu.memory_space<vmem>>, %arg5: memref<8x32xf32, #tpu.memory_space<vmem>>) attributes {dimension_semantics = [#tpu.dimension_semantics<parallel>], iteration_bounds = array<i64: 2>, scalar_prefetch = 0 : i64, scratch_operands = 0 : i64, tpu.core_type = #tpu.core_type<tc>, window_params = [{transform_indices = @transform_0, window_bounds = array<i64: 8, 64>}, {pipeline_mode = #tpu.pipeline_mode<synchronous>, transform_indices = @transform_1, window_bounds = array<i64: 64, 32>}, {pipeline_mode = #tpu.pipeline_mode<synchronous>, transform_indices = @transform_2, window_bounds = array<i64: 3, 32>}, {transform_indices = @transform_3, window_bounds = array<i64: 8, 32>}, {transform_indices = @transform_4, window_bounds = array<i64: 8, 32>}]} {
    %c0 = arith.constant 0 : index
    %c0_0 = arith.constant 0 : index
    %0 = vector.load %arg1[%c0, %c0_0] : memref<8x64xf32, #tpu.memory_space<vmem>>, vector<8x64xf32>
    %c0_1 = arith.constant 0 : index
    %c0_2 = arith.constant 0 : index
    %1 = vector.load %arg2[%c0_1, %c0_2] : memref<64x32xf32, #tpu.memory_space<vmem>>, vector<64x32xf32>
    %cst = arith.constant dense<0.000000e+00> : vector<8x32xf32>
    %2 = tpu.matmul %0, %1, %cst {dimension_numbers = #tpu.dot_dimension_numbers<[1], [0], [0], [1], [0, 0, 1, 1], [], []>} : vector<8x64xf32>, vector<64x32xf32>, vector<8x32xf32> -> vector<8x32xf32>
    %c0_3 = arith.constant 0 : index
    %c0_4 = arith.constant 0 : index
    %3 = vector.load %arg3[%c0_3, %c0_4] : memref<3x32xf32, #tpu.memory_space<vmem>>, vector<3x32xf32>
    %4 = vector.extract_strided_slice %3 {offsets = [0, 0], sizes = [1, 32], strides = [1, 1]} : vector<3x32xf32> to vector<1x32xf32>
    %5 = vector.extract_strided_slice %3 {offsets = [1, 0], sizes = [1, 32], strides = [1, 1]} : vector<3x32xf32> to vector<1x32xf32>
    %6 = vector.extract_strided_slice %3 {offsets = [2, 0], sizes = [1, 32], strides = [1, 1]} : vector<3x32xf32> to vector<1x32xf32>
    %c0_5 = arith.constant 0 : index
    %c0_6 = arith.constant 0 : index
    %7 = vector.load %arg4[%c0_5, %c0_6] : memref<8x32xf32, #tpu.memory_space<vmem>>, vector<8x32xf32>
    %8 = vector.broadcast %4 : vector<1x32xf32> to vector<8x32xf32>
    %9 = arith.addf %7, %8 : vector<8x32xf32>
    %10 = arith.addf %2, %9 : vector<8x32xf32>
    %cst_7 = arith.constant dense<0.000000e+00> : vector<8xf32>
    %11 = vector.multi_reduction <add>, %10, %cst_7 [1] : vector<8x32xf32> to vector<8xf32>
    %12 = vector.shape_cast %11 : vector<8xf32> to vector<8x1xf32>
    %cst_8 = arith.constant 3.200000e+01 : f32
    %13 = vector.broadcast %cst_8 : f32 to vector<8x1xf32>
    %14 = arith.divf %12, %13 : vector<8x1xf32>
    %15 = vector.broadcast %14 : vector<8x1xf32> to vector<8x32xf32>
    %16 = arith.subf %10, %15 : vector<8x32xf32>
    %17 = arith.mulf %16, %16 : vector<8x32xf32>
    %cst_9 = arith.constant dense<0.000000e+00> : vector<8xf32>
    %18 = vector.multi_reduction <add>, %17, %cst_9 [1] : vector<8x32xf32> to vector<8xf32>
    %19 = vector.shape_cast %18 : vector<8xf32> to vector<8x1xf32>
    %cst_10 = arith.constant 3.200000e+01 : f32
    %20 = vector.broadcast %cst_10 : f32 to vector<8x1xf32>
    %21 = arith.divf %19, %20 : vector<8x1xf32>
    %cst_11 = arith.constant 9.99999996E-13 : f32
    %22 = vector.broadcast %cst_11 : f32 to vector<8x1xf32>
    %23 = arith.addf %21, %22 : vector<8x1xf32>
    %24 = math.rsqrt %23 : vector<8x1xf32>
    %25 = vector.broadcast %24 : vector<8x1xf32> to vector<8x32xf32>
    %26 = arith.mulf %16, %25 : vector<8x32xf32>
    %27 = vector.broadcast %5 : vector<1x32xf32> to vector<8x32xf32>
    %28 = arith.mulf %26, %27 : vector<8x32xf32>
    %29 = vector.broadcast %6 : vector<1x32xf32> to vector<8x32xf32>
    %30 = arith.addf %28, %29 : vector<8x32xf32>
    %c0_12 = arith.constant 0 : index
    %c0_13 = arith.constant 0 : index
    %31 = vector.load %arg5[%c0_12, %c0_13] : memref<8x32xf32, #tpu.memory_space<vmem>>, vector<8x32xf32>
    tpu.vector_store %arg5[%c0_12, %c0_13], %30 {strides = array<i32>} : memref<8x32xf32, #tpu.memory_space<vmem>>, vector<8x32xf32>,
    return
  }
  func.func @transform_0(%arg0: i32) -> (i32, i32) {
    %c0_i32 = arith.constant 0 : i32
    %c0_i32_0 = arith.constant 0 : i32
    return %arg0, %c0_i32 : i32, i32
  }
  func.func @transform_1(%arg0: i32) -> (i32, i32) {
    %c0_i32 = arith.constant 0 : i32
    %c0_i32_0 = arith.constant 0 : i32
    %c0_i32_1 = arith.constant 0 : i32
    return %c0_i32, %c0_i32_0 : i32, i32
  }
  func.func @transform_2(%arg0: i32) -> (i32, i32) {
    %c0_i32 = arith.constant 0 : i32
    %c0_i32_0 = arith.constant 0 : i32
    %c0_i32_1 = arith.constant 0 : i32
    return %c0_i32, %c0_i32_0 : i32, i32
  }
  func.func @transform_3(%arg0: i32) -> (i32, i32) {
    %c0_i32 = arith.constant 0 : i32
    %c0_i32_0 = arith.constant 0 : i32
    return %arg0, %c0_i32 : i32, i32
  }
  func.func @transform_4(%arg0: i32) -> (i32, i32) {
    %c0_i32 = arith.constant 0 : i32
    %c0_i32_0 = arith.constant 0 : i32
    return %arg0, %c0_i32 : i32, i32
  }
}

</mosaic_0001>

<bundles_post_ra>
// kernel: tpu_custom_call.1
= control target key start
LH: loop header
LB: loop body
LE: loop exit
PB: predicated region body
PF: predicated region fallthrough
CT: control target
= control target key end

     0   :  { %9 = vsyncpa [#allocation3], 0  ;;  %s733_s0 = inlined_call_operand.vmem [shape: f32[16,64], index: 0, kind: input, shape index: {}]   ;;  %s734_s1 = inlined_call_operand.vmem [shape: f32[64,32], index: 1, kind: input, shape index: {}]   ;;  %s735_s2 = inlined_call_operand.vmem [shape: f32[3,32], index: 2, kind: input, shape index: {}]   ;;  %s736_s3 = inlined_call_operand.vmem [shape: f32[16,32], index: 3, kind: input, shape index: {}]   ;;  %s737_s4 = inlined_call_operand.hbm [shape: f32[16,32], index: 4, kind: output, shape index: {}]  }
   0x1   :  { %11 = vsyncpa [#allocation3 + $0x1], 0  ;;  %s600_s15 = smov 0   ;;  %s602_s16 = smov 0  }
   0x2   :  { %s604_s17 = smov 0   ;;  %s606_s18 = smov 0  }
   0x3 LB: > { %s621_s19 = sadd.s32 4294967295, %s569_s18   ;;  %s411_s20 = sadd.s32 4294967294, %s569_s18   ;;  %s569_s18 = sphi %s606_s18, %s743_s18   ;;  %s565_s17 = sphi %s604_s17, %s742_s17   ;;  %s561_s16 = sphi %s602_s16, %s741_s16   ;;  %s557_s15 = sphi %s600_s15, %s740_s15  }
   0x4   : > { %s625_s21 = sadd.s32 1, %s569_s18   ;;  %s118_s22 = sadd.s32 1, %s565_s17 }
   0x5   : > { %s115_s23 = ssub.s32 %s569_s18, %s625_s21  ;;  %p128_p0 = scmp.ne.s32.totalorder %s565_s17, %s561_s16 }
   0x6   : > { %p116_p1 = scmp.eq.s32.totalorder %s115_s23, 0  ;;  %p129_p2 = scmp.eq.s32.totalorder %s621_s19, 1 }
   0x7   : > { %p134_p3 = scmp.ne.s32.totalorder %s561_s16, %s557_s15  ;;  %p135_p4 = scmp.eq.s32.totalorder %s411_s20, 1 }
   0x8   : > { %s636_s24 = scalar_select %p116_p1, %s565_s17, %s118_s22  }
   0x9   : > { %p638_p5 = por %p129_p2, %p128_p0  ;;  %p642_p6 = por %p135_p4, %p134_p3 }
   0xa   : > { %p414_p7 = scmp.ge.s32.totalorder %s569_s18, 1  ;;  %p173_p8 = scmp.lt.s32.totalorder %s569_s18, 3 }
   0xc   : > { %p174_p9 = pnand %p414_p7, %p173_p8 }
   0xd   : > { %v211_v0 = vld [vmem:[%s734_s1] sm:$0xff] (!%p174_p9)  ;;  %v212_v1 = vld [vmem:[%s734_s1 + $0x8] sm:$0xff] (!%p174_p9)  ;;  %v213_v2 = vld [vmem:[%s734_s1 + $0x10] sm:$0xff] (!%p174_p9)  ;;  %v571_v3 = vmov (!%p174_p9), 0.0|0.0   ;;  %vm572_vm0 = vmmov (!%p174_p9), 0   ;;  %v573_v6 = vmov (!%p174_p9), 0.0   ;;  %v221_v15 = vlaneseq (!%p174_p9) }
   0xe   : > { %177 = sbr.rel (%p174_p9) target bundleno = 572 (0x23c), region = 36  ;;  %451 = vmatprep.subr.bf16.mxu0 (!%p174_p9), %v571_v3  ;;  %v452_v4 = vpack.c.bf16 (!%p174_p9), %v212_v1, %v211_v0  ;;  %v214_v5 = vld [vmem:[%s734_s1 + $0x18] sm:$0xff] (!%p174_p9)  ;;  %448 = vmatprep.mubr.msk.f32.mxu0 (!%p174_p9), %vm572_vm0, %v573_v6  ;;  %p202_p10 = scmp.lt.s32.totalorder (!%p174_p9), %s621_s19, 1  ;;  %v215_v8 = vld [vmem:[%s734_s1 + $0x20] sm:$0xff] (!%p174_p9)  ;;  %v216_v9 = vld [vmem:[%s734_s1 + $0x28] sm:$0xff] (!%p174_p9)  ;;  %vm226_vm1 = vcmask (!%p174_p9), 523264  }
   0xf   : > { %v455_v7 = vpack.c.bf16 (!%p174_p9), %v214_v5, %v213_v2  ;;  %v458_v10 = vpack.c.bf16 (!%p174_p9), %v216_v9, %v215_v8  ;;  %v217_v11 = vld [vmem:[%s734_s1 + $0x30] sm:$0xff] (!%p174_p9)  ;;  %v218_v12 = vld [vmem:[%s734_s1 + $0x38] sm:$0xff] (!%p174_p9)  ;;  %v222_v16 = vshrl.u32 (!%p174_p9), %v221_v15, 7  ;;  %v219_v18 = vld [vmem:[%s735_s2] sm:$0x7] (!%p174_p9)  ;;  %vm300_vm2 = vcmask (!%p174_p9), 261120  }
  0x10   : > { %453 = vmatpush3.bf16.msra.mxu0 (!%p174_p9), %v452_v4  ;;  %v461_v13 = vpack.c.bf16 (!%p174_p9), %v218_v12, %v217_v11  ;;  %s199_s10 = sand.u32 (!%p174_p9), 1, %s561_s16   ;;  %s420_s12 = sshll.u32 (!%p174_p9), %s621_s19, 7 }
  0x11   : > { %454 = vmatprep.subr.bf16.mxu0 (!%p174_p9), %v571_v3  ;;  %v223_v17 = vsub.s32 (!%p174_p9), 0, %v222_v16  ;;  %v317_v34 = vsub.s32 (!%p174_p9), 1, %v222_v16  ;;  %s415_s11 = sshll.u32 (!%p174_p9), %s199_s10, 3  ;;  %v322_v35 = vsub.s32 (!%p174_p9), 2, %v222_v16  ;;  %s690_s23 = scalar_lea.hbm (!%p174_p9), %s737_s4, %s420_s12 }
  0x13   : > { %v224_v19 = vrot.slane (!%p174_p9), %v219_v18, %v223_v17  ;;  %v318_v36 = vrot.slane (!%p174_p9), %v219_v18, %v317_v34  ;;  %v323_v38 = vrot.slane (!%p174_p9), %v219_v18, %v322_v35 }
  0x14   : > { %456 = vmatpush3.bf16.msra.mxu0 (!%p174_p9), %v455_v7 }
  0x15   : > { %s203_s13 = scalar_select %p202_p10, %s621_s19, 1  ;;  %457 = vmatprep.subr.bf16.mxu0 %v571_v3 }
  0x16   : > { %s574_s19 = smov [#allocation2]  }
  0x17   : > { %s416_s27 = sshll.u32 %s203_s13, 3  ;;  %s201_s13 = scalar_lea.vmem [#allocation2], %s415_s11 }
  0x18   : > { %459 = vmatpush3.bf16.msra.mxu0 %v458_v10  ;;  %s205_s30 = scalar_lea.vmem %s733_s0, %s416_s27  ;;  %s209_s9 = scalar_lea.vmem %s736_s3, %s416_s27 }
  0x19   : > { %460 = vmatprep.subr.bf16.mxu0 %v571_v3  ;;  %v210_v14 = vld [vmem:[%s205_s30] sm:$0xff]  ;;  %s340_s14 = sshll.u32 %s201_s13, 4  ;;  %s327_s27 = scalar_lea.sflag [#allocation3], %s199_s10  ;;  %s692_s14 = int_to_ptr.vmem [resolvable:$true] %s340_s14 }
  0x1a   : > { %v220_v20 = vld [vmem:[%s209_s9] sm:$0xff]  ;;  %s507_s28 = scalar_lea.vmem %s692_s14, 128  ;;  %s511_s29 = sshll.u32 %s574_s19, 4  ;;  %s512_s29 = int_to_ptr.vmem [resolvable:$false] %s511_s29 }
  0x1b   : > { %v225_v21 = vadd.f32 %v224_v19, %v220_v20  ;;  %p508_p11 = scmp.ne.s32.totalorder %s692_s14, %s507_s28  ;;  %s513_s30 = scalar_lea.vmem %s512_s29, 256 }
  0x1c   : > { %462 = vmatpush3.bf16.msra.mxu0 %v461_v13  ;;  %p514_p0 = scmp.lt.s32.totalorder %s692_s14, %s512_s29  ;;  %p515_p1 = scmp.lt.s32.totalorder %s513_s30, %s507_s28 }
  0x1d   : > { %p509_p12 = pnand %p508_p11, %p638_p5 }
  0x1e   : > { %p516_p2 = por %p515_p1, %p514_p0 }
  0x1f   : > { %449 = vmatmul.mubr.msk.f32.vlgmr.msra.gmra.mrb[0].mxu0 %vm226_vm1, %v210_v14  ;;  %p510_p13 = pneg %p509_p12 }
  0x21   : > { %p517_p3 = pnand %p516_p2, %p510_p13 }
  0xf2   : > { %v296_v22 = vpop.f32.mrb[0].mxu0 }
  0xf3   : > { %v297_v23 = vadd.f32 %v296_v22, %v225_v21  ;;  %v450_v24 = vpop.f32.mrb[1].mxu0 }
  0xf5   : > { %v301_v25 = vsel %vm300_vm2, %v297_v23, 0.0 }
  0xf6   : > { %302 = vadd.xlane.f32.xlu0 %v301_v25 }
 0x183   : > { %v303_v26 = vpop.xlane.xlu0 %302 }
 0x184   : > { %v305_v27 = vmul.f32 0.03125, %v303_v26 }
 0x186   : > { %v306_v28 = vsub.f32 %v297_v23, %v305_v27 }
 0x188   : > { %v307_v29 = vmul.f32 %v306_v28, %v306_v28 }
 0x18a   : > { %v308_v30 = vsel %vm300_vm2, %v307_v29, 0.0 }
 0x18b   : > { %309 = vadd.xlane.f32.xlu0 %v308_v30 }
 0x218   : > { %v310_v31 = vpop.xlane.xlu0 %309 }
 0x219   : > { %v311_v32 = vmul.f32 0.03125, %v310_v31 }
 0x21b   : > { %v312_v33 = vadd.f32 1e-12, %v311_v32 }
 0x21d   : > { %505 = vrsqrt.f32 %v312_v33 }
 0x227   : > { %v506_v37 = vpop.eup %505 }
 0x228   : > { %v314_v39 = vmul.f32 %v506_v37, %v306_v28 }
 0x22a   : > { %v319_v40 = vmul.f32 %v318_v36, %v314_v39 }
 0x22c   : > { %v324_v41 = vadd.f32 %v323_v38, %v319_v40 }
 0x22e   : > { %325 = vst.msk [vmem:[%s201_s13] sm:$0xff] %vm300_vm2, %v324_v41 }
 0x22f   : > { %520 = shalt.err (!%p517_p3)
}
 0x230   : > { %s521_s5 = scalar_lea.hbm %s690_s23, 128  ;;  %s525_s8 = scalar_lea.hbm %s737_s4, 256 }
 0x231   : > { %p522_p4 = scmp.ne.s32.totalorder %s690_s23, %s521_s5  ;;  %p526_p9 = scmp.lt.u32.totalorder %s690_s23, %s737_s4 }
 0x232   : > { %p527_p10 = scmp.lt.u32.totalorder %s525_s8, %s521_s5  ;;  %p529_p12 = scmp.lt.u32.totalorder %s521_s5, %s690_s23 }
 0x233   : > { %p523_p7 = pnand %p522_p4, %p638_p5 }
 0x234   : > { %p528_p11 = por %p527_p10, %p526_p9 }
 0x235   : > { %p524_p8 = pneg %p523_p7 }
 0x236   : > { %p530_p13 = por %p529_p12, %p528_p11 }
 0x238   : > { %p531_p0 = pnand %p530_p13, %p524_p8 }
 0x23a   : > { %534 = shalt.err (!%p531_p0)
}
 0x23b   : > { %463 = dma.vmem_to_hbm [thread:$0]  (%p638_p5), %s692_s14, 128, %s690_s23, %s327_s27  }
 0x23c PF: > { %p469_p1 = scmp.ge.s32.totalorder %s569_s18, 2  ;;  %s352_s11 = sand.u32 1, %s557_s15  }
 0x23d   : > { %s353_s12 = scalar_lea.sflag [#allocation3], %s352_s11 }
 0x23e   : > { %p466_p2 = pnand %p469_p1, %p642_p6 }
 0x240   : > { %552 = dma.done.wait (!%p466_p2), %s353_s12, 128  }
 0x241   : > { %554 = vsyncadd (!%p466_p2), %s353_s12, 4294967168  ;;  %p14_p3 = scmp.ge.s32.totalorder %s625_s21, 4   ;;  %s740_s15 = smov %s561_s16 }
 0x242   : > { %s741_s16 = smov %s565_s17  ;;  %s742_s17 = smov %s636_s24 }
 0x243   : > { %s743_s18 = smov %s625_s21  ;;  %16 = sbr.rel (!%p14_p3) target bundleno = 3 (0x3), region = 74 }
 0x24a   :  { %358 = vsyncpa [#allocation3], 1 }
 0x24b   :  { %360 = vsyncpa [#allocation3 + $0x1], 1 }

</bundles_post_ra>
